<compile_context>
chip_gen: v7x
topology: tpu7x:2x2x1
jax: 0.10.0
libtpu: 0.0.40
codegen_flags: <defaults>
</compile_context>

<pallas_src>
import functools
import math

import jax
import jax.numpy as jnp
from jax.experimental import pallas as pl
from jax.experimental.pallas import tpu as pltpu


def _sinusoidal_pe(seq_len: int, emb_dim: int) -> jax.Array:
    """float32 [seq_len, emb_dim] table, identical to the PyTorch buffer."""
    position = jnp.arange(seq_len, dtype=jnp.float32)[:, None]                 # [S, 1]
    div_term = jnp.exp(jnp.arange(0, emb_dim, 2, dtype=jnp.float32)
                       * (-math.log(10000.0) / emb_dim))                       # [ceil(D/2)]
    ang = position * div_term                                                  # [S, ceil(D/2)]
    pe = jnp.zeros((seq_len, emb_dim), dtype=jnp.float32)
    pe = pe.at[:, 0::2].set(jnp.sin(ang))
    pe = pe.at[:, 1::2].set(jnp.cos(ang)[:, : emb_dim // 2])                   # safe for odd D
    return pe


def _pe_add_kernel(x_ref, pe_ref, o_ref, *, reps: int):
    # x_ref/o_ref: [tile_seq, tile_c] with tile_c = reps * emb_dim (flattened batch*emb).
    # pe_ref:      [tile_seq, emb_dim].
    pe = pe_ref[...].astype(jnp.float32)
    if reps > 1:
        pe = jnp.tile(pe, (1, reps))            # lane-axis repeat == broadcast over batch
    o_ref[...] = (x_ref[...].astype(jnp.float32) + pe).astype(o_ref.dtype)


def _round_up(n: int, m: int) -> int:
    return -(-n // m) * m


def _vmem_capacity_bytes() -> int:
    try:
        return int(pltpu.get_tpu_info().vmem_capacity_bytes)
    except Exception:
        return 64 << 20   # conservative fallback (v7x per-TensorCore VMEM)


_TARGET_BLOCK_BYTES = 8 << 20   # ~8 MiB blocks: DMA time >> 0.35 us/step overhead


def _pick_tiles(S: int, C: int, D: int, itemsize: int, vmem_cap: int):
    """Pick (tile_seq, tile_c) for the flattened [S, C=B*D] layout."""
    sub = 8 * max(1, 4 // itemsize)            # sublane granularity (f32:8, bf16:16, i8:32)
    lane = 128
    # Live VMEM ~= 2x x-in + 2x x-out + 2x pe; keep well under physical VMEM.
    live_budget = min(int(0.40 * vmem_cap), 48 << 20)
    target = min(_TARGET_BLOCK_BYTES, max(256 << 10, live_budget // 5))

    row_bytes = _round_up(C, lane) * itemsize
    tile_c = C

    if S <= sub:
        tile_s = S
    else:
        tile_s = max(sub, (target // row_bytes) // sub * sub)
        tile_s = min(tile_s, max(sub, S // sub * sub))
        # keep >= ~4 grid steps along seq when the array allows it
        # (megacore sharding + pipeline depth).
        if S >= 4 * sub:
            tile_s = min(tile_s, max(sub, (S // 4) // sub * sub))

    # Pathological case: even the minimum-height block exceeds the budget.
    # Chunk the flattened (batch*emb) axis in whole-batch, lane-aligned units so
    # the in-kernel pe broadcast stays a simple repeat.
    min_rows = min(S, sub)
    if min_rows * row_bytes > target:
        unit = (D * lane) // math.gcd(D, lane)         # lcm(D, 128)
        if unit < C:
            tile_s = min_rows
            tile_c = max(unit, (target // (min_rows * itemsize)) // unit * unit)
            tile_c = min(tile_c, C // unit * unit)

    return tile_s, tile_c


def positional_encoding(x: jax.Array) -> jax.Array:
    """x: [seq_len, batch, emb_dim] -> x + pe[:seq_len] (broadcast over batch)."""
    assert x.ndim == 3, "expected x of shape [seq_len, batch, emb_dim]"
    S, B, D = x.shape
    C = B * D
    itemsize = jnp.dtype(x.dtype).itemsize

    # PE table built once in plain JAX (no transcendentals in the hot path);
    # streamed in x's dtype for sub-f32 inputs to halve its HBM read stream.
    pe = _sinusoidal_pe(S, D)
    if itemsize < 4:
        pe = pe.astype(x.dtype)
    pe_itemsize = jnp.dtype(pe.dtype).itemsize

    # Lane/sublane-dense layout: flatten (batch, emb) onto the lane axis.
    x2 = x.reshape(S, C)

    vmem_cap = _vmem_capacity_bytes()
    tile_s, tile_c = _pick_tiles(S, C, D, itemsize, vmem_cap)
    reps = tile_c // D                           # whole-batch chunks by construction

    # VMEM accounting including layout padding (sublane/lane round-up).
    x_sub = 8 * max(1, 4 // itemsize)
    pe_sub = 8 * max(1, 4 // pe_itemsize)
    x_blk = _round_up(tile_s, x_sub) * _round_up(tile_c, 128) * itemsize
    pe_blk = _round_up(tile_s, pe_sub) * _round_up(D, 128) * pe_itemsize
    live = 4 * x_blk + 2 * pe_blk                # in + out double-buffered, pe double-buffered
    vmem_limit = int(min(int(0.9 * vmem_cap), max(32 << 20, live + (8 << 20))))

    grid = (pl.cdiv(S, tile_s), pl.cdiv(C, tile_c))

    kernel = functools.partial(_pe_add_kernel, reps=reps)
    out2 = pl.pallas_call(
        kernel,
        out_shape=jax.ShapeDtypeStruct((S, C), x.dtype),
        grid=grid,
        in_specs=[
            pl.BlockSpec((tile_s, tile_c), lambda i, j: (i, j)),
            pl.BlockSpec((tile_s, D), lambda i, j: (i, 0)),   # constant over j -> no re-DMA
        ],
        out_specs=pl.BlockSpec((tile_s, tile_c), lambda i, j: (i, j)),
        compiler_params=pltpu.CompilerParams(
            dimension_semantics=("parallel", "parallel"),
            vmem_limit_bytes=vmem_limit,
        ),
    )(x2, pe)
    return out2.reshape(S, B, D)


if __name__ == "__main__":
    # Small canonical shape consistent with the forward: [seq_len, batch, emb_dim].
    S, B, D = 8, 2, 32
    key = jax.random.PRNGKey(0)
    x = jax.random.normal(key, (S, B, D), dtype=jnp.float32)

    ref = x + _sinusoidal_pe(S, D)[:, None, :]
    out = jax.block_until_ready(positional_encoding(x))
    assert out.shape == x.shape and out.dtype == x.dtype
    assert jnp.allclose(out, ref, atol=1e-5, rtol=1e-5), "f32 mismatch vs reference"

    # Ragged seq_len + bf16 path (exercises cdiv grid, bf16 pe stream, in-kernel broadcast).
    S2, B2, D2 = 100, 3, 48
    x2 = jax.random.normal(jax.random.PRNGKey(1), (S2, B2, D2), dtype=jnp.bfloat16)
    pe2 = _sinusoidal_pe(S2, D2).astype(jnp.bfloat16).astype(jnp.float32)[:, None, :]
    ref2 = (x2.astype(jnp.float32) + pe2).astype(jnp.bfloat16)
    out2 = jax.block_until_ready(positional_encoding(x2))
    assert out2.shape == x2.shape and out2.dtype == x2.dtype
    assert jnp.allclose(out2.astype(jnp.float32), ref2.astype(jnp.float32),
                        atol=1e-2, rtol=1e-2), "bf16 mismatch vs reference"

    print("KERNEL_OK")
</pallas_src>

<mosaic_0001>
module attributes {stable_mosaic.version = 11 : i64} {
  func.func @_pe_add_kernel(%arg0: i32, %arg1: i32, %arg2: memref<8x64xf32, #tpu.memory_space<vmem>>, %arg3: memref<8x32xf32, #tpu.memory_space<vmem>>, %arg4: memref<8x64xf32, #tpu.memory_space<vmem>>) attributes {dimension_semantics = [#tpu.dimension_semantics<parallel>, #tpu.dimension_semantics<parallel>], iteration_bounds = array<i64: 1, 1>, scalar_prefetch = 0 : i64, scratch_operands = 0 : i64, tpu.core_type = #tpu.core_type<tc>, window_params = [{transform_indices = @transform_0, window_bounds = array<i64: 8, 64>}, {transform_indices = @transform_1, window_bounds = array<i64: 8, 32>}, {transform_indices = @transform_2, window_bounds = array<i64: 8, 64>}]} {
    %c0 = arith.constant 0 : index
    %c0_0 = arith.constant 0 : index
    %0 = vector.load %arg3[%c0, %c0_0] : memref<8x32xf32, #tpu.memory_space<vmem>>, vector<8x32xf32>
    %1 = tpu.concatenate %0, %0 in 1 : vector<8x32xf32>, vector<8x32xf32> -> vector<8x64xf32>
    %c0_1 = arith.constant 0 : index
    %c0_2 = arith.constant 0 : index
    %2 = vector.load %arg2[%c0_1, %c0_2] : memref<8x64xf32, #tpu.memory_space<vmem>>, vector<8x64xf32>
    %3 = arith.addf %2, %1 : vector<8x64xf32>
    %c0_3 = arith.constant 0 : index
    %c0_4 = arith.constant 0 : index
    %4 = vector.load %arg4[%c0_3, %c0_4] : memref<8x64xf32, #tpu.memory_space<vmem>>, vector<8x64xf32>
    tpu.vector_store %arg4[%c0_3, %c0_4], %3 {strides = array<i32>} : memref<8x64xf32, #tpu.memory_space<vmem>>, vector<8x64xf32>,
    return
  }
  func.func @transform_0(%arg0: i32, %arg1: i32) -> (i32, i32) {
    %c0_i32 = arith.constant 0 : i32
    return %arg0, %arg1 : i32, i32
  }
  func.func @transform_1(%arg0: i32, %arg1: i32) -> (i32, i32) {
    %c0_i32 = arith.constant 0 : i32
    %c0_i32_0 = arith.constant 0 : i32
    return %arg0, %c0_i32 : i32, i32
  }
  func.func @transform_2(%arg0: i32, %arg1: i32) -> (i32, i32) {
    %c0_i32 = arith.constant 0 : i32
    return %arg0, %arg1 : i32, i32
  }
}

</mosaic_0001>

<bundles_post_ra>
// kernel: tpu_custom_call.1
= control target key start
LH: loop header
LB: loop body
LE: loop exit
PB: predicated region body
PF: predicated region fallthrough
CT: control target
= control target key end

     0   :  { %7 = vsyncpa [#allocation3], 0  ;;  %s194_s0 = inlined_call_operand.hbm [shape: f32[8,64], index: 0, kind: input, shape index: {}]   ;;  %s195_s1 = inlined_call_operand.hbm [shape: f32[8,32], index: 1, kind: input, shape index: {}]   ;;  %s196_s2 = inlined_call_operand.hbm [shape: f32[8,64], index: 2, kind: output, shape index: {}]  }
   0x1   :  { %8 = vsyncpa [#allocation6], 0 }
   0x2   :  { %9 = vsyncpa [#allocation4], 0  ;;  %s139_s9 = smov [#allocation2]   ;;  %s140_s11 = smov [#allocation5]  }
   0x3   :  { %s16_s10 = sshll.u32 %s139_s9, 4  ;;  %s26_s12 = sshll.u32 %s140_s11, 4  ;;  %s17_s10 = int_to_ptr.vmem [resolvable:$true] %s16_s10  ;;  %s27_s12 = int_to_ptr.vmem [resolvable:$true] %s26_s12 }
   0x4   :  { %s67_s15 = scalar_lea.hbm %s194_s0, 128 }
   0x5   :  { %p68_p0 = scmp.ne.s32.totalorder %s194_s0, %s67_s15  ;;  %p71_p1 = scmp.lt.u32.totalorder %s67_s15, %s194_s0 }
   0x7   :  { %p73_p2 = pnand %p71_p1, %p68_p0 }
   0x9   :  { %76 = shalt.err (!%p73_p2)
}
   0xa   :  { %s77_s20 = scalar_lea.vmem %s17_s10, 128  ;;  %p82_p4 = scmp.lt.s32.totalorder %s17_s10, %s17_s10 }
   0xb   :  { %p78_p3 = scmp.ne.s32.totalorder %s17_s10, %s77_s20  ;;  %p83_p5 = scmp.lt.s32.totalorder %s77_s20, %s77_s20 }
   0xd   :  { %p84_p6 = por %p83_p5, %p82_p4 }
   0xf   :  { %p85_p7 = pnand %p84_p6, %p78_p3 }
  0x11   :  { %88 = shalt.err (!%p85_p7)
}
  0x12   :  { %19 = dma.hbm_to_vmem [thread:$0]  %s194_s0, 128, %s17_s10, [#allocation3]  }
  0x13   :  { %s89_s25 = scalar_lea.hbm %s195_s1, 128 }
  0x14   :  { %p90_p8 = scmp.ne.s32.totalorder %s195_s1, %s89_s25  ;;  %p93_p9 = scmp.lt.u32.totalorder %s89_s25, %s195_s1 }
  0x16   :  { %p95_p10 = pnand %p93_p9, %p90_p8 }
  0x18   :  { %98 = shalt.err (!%p95_p10)
}
  0x19   :  { %s99_s30 = scalar_lea.vmem %s27_s12, 128  ;;  %p104_p12 = scmp.lt.s32.totalorder %s27_s12, %s27_s12 }
  0x1a   :  { %p100_p11 = scmp.ne.s32.totalorder %s27_s12, %s99_s30  ;;  %p105_p13 = scmp.lt.s32.totalorder %s99_s30, %s99_s30 }
  0x1c   :  { %p106_p0 = por %p105_p13, %p104_p12 }
  0x1e   :  { %p107_p1 = pnand %p106_p0, %p100_p11 }
  0x20   :  { %110 = shalt.err (!%p107_p1)
}
  0x21   :  { %29 = dma.hbm_to_vmem [thread:$0]  %s195_s1, 128, %s27_s12, [#allocation6]  }
  0x22   :  { %133 = dma.done.wait [#allocation3], 128  }
  0x23   :  { %134 = vsyncadd [#allocation3], 4294967168 }
  0x24   :  { %135 = dma.done.wait [#allocation6], 128  }
  0x25   :  { %136 = vsyncadd [#allocation6], 4294967168  ;;  %v36_v0 = vld [vmem:[#allocation5] sm:$0xff]  ;;  %s141_s4 = smov 32   ;;  %vm41_vm0 = vcmask 261120   ;;  %v43_v1 = vld [vmem:[#allocation2] sm:$0xff] }
  0x26   :  { %38 = vrot.lane.b32.xlu0 %v36_v0, %s141_s4  ;;  %s142_s5 = smov [#allocation7]   ;;  %vm45_vm1 = vcmask 523264  }
  0x27   :  { %s53_s6 = sshll.u32 %s142_s5, 4  ;;  %s54_s6 = int_to_ptr.vmem [resolvable:$true] %s53_s6 }
  0x28   :  { %s111_s7 = scalar_lea.vmem %s54_s6, 128  ;;  %p116_p3 = scmp.lt.s32.totalorder %s54_s6, %s54_s6 }
  0x29   :  { %p112_p2 = scmp.ne.s32.totalorder %s54_s6, %s111_s7  ;;  %p117_p4 = scmp.lt.s32.totalorder %s111_s7, %s111_s7 }
  0x2b   :  { %p118_p5 = por %p117_p4, %p116_p3 }
  0x2d   :  { %p119_p6 = pnand %p118_p5, %p112_p2 }
  0x98   :  { %v39_v2 = vpop.permute.xlu0 %38 }
  0x99   :  { %v42_v3 = vsel %vm41_vm0, %v36_v0, %v39_v2 }
  0x9a   :  { %v44_v4 = vadd.f32 %v43_v1, %v42_v3 }
  0x9c   :  { %46 = vst.msk [vmem:[#allocation7] sm:$0xff] %vm45_vm1, %v44_v4 }
  0x9d   :  { %122 = shalt.err (!%p119_p6)
}
  0x9e   :  { %s123_s9 = scalar_lea.hbm %s196_s2, 128 }
  0x9f   :  { %p124_p7 = scmp.ne.s32.totalorder %s196_s2, %s123_s9  ;;  %p127_p8 = scmp.lt.u32.totalorder %s123_s9, %s196_s2 }
  0xa1   :  { %p129_p9 = pnand %p127_p8, %p124_p7 }
  0xa3   :  { %132 = shalt.err (!%p129_p9)
}
  0xa4   :  { %56 = dma.vmem_to_hbm [thread:$0]  %s54_s6, 128, %s196_s2, [#allocation4]  }
  0xa5   :  { %137 = dma.done.wait [#allocation4], 128  }
  0xa6   :  { %138 = vsyncadd [#allocation4], 4294967168 }
  0xa7   :  { %60 = vsyncpa [#allocation3], 1 }
  0xa8   :  { %61 = vsyncpa [#allocation6], 1 }
  0xa9   :  { %62 = vsyncpa [#allocation4], 1 }

</bundles_post_ra>
